<compile_context>
chip_gen: v6e
topology: v6e:2x2x1
jax: 0.10.0
libtpu: 0.0.40
codegen_flags: <defaults>
</compile_context>

<pallas_src>
import functools

import jax
import jax.numpy as jnp
from jax.experimental import pallas as pl
from jax.experimental.pallas import tpu as pltpu


def _fscore_sums_kernel(x_ref, g_ref, out_ref, *, threshold, hw, tile_l, ragged):
    """Grid: (N, num_l_tiles).  Axis 1 walks lane tiles of the H*W axis.

    x_ref, g_ref : (C, tile_l)  logits / ground-truth tile of one batch element
    out_ref      : (C, 3)       per-class [sum_pr, sum_gt, sum_tp] for batch n
    """
    l = pl.program_id(1)

    @pl.when(l == 0)
    def _():
        out_ref[...] = jnp.zeros_like(out_ref)

    x = x_ref[...].astype(jnp.float32)          # (C, tile_l)
    gt = g_ref[...].astype(jnp.float32)         # (C, tile_l)

    if ragged:  # static branch; only emitted when H*W % tile_l != 0
        col = l * tile_l + jax.lax.broadcasted_iota(jnp.int32, x.shape, 1)
        valid = col < hw
        x = jnp.where(valid, x, 0.0)            # kill OOB garbage before exp
        gt = jnp.where(valid, gt, 0.0)

    # softmax over the class (sublane) axis
    m = jnp.max(x, axis=0, keepdims=True)
    e = jnp.exp(x - m)
    pr = e * pl.reciprocal(jnp.sum(e, axis=0, keepdims=True), approx=True)

    if threshold is not None:                   # static (trace-time) branch
        pr = (pr > threshold).astype(jnp.float32)

    if ragged:
        pr = jnp.where(valid, pr, 0.0)          # softmax of padded cols is 1/C

    out_ref[:, 0:1] += jnp.sum(pr, axis=1, keepdims=True)
    out_ref[:, 1:2] += jnp.sum(gt, axis=1, keepdims=True)
    out_ref[:, 2:3] += jnp.sum(pr * gt, axis=1, keepdims=True)


def _pick_tile_l(hw, c, itemsize=4, target_block_bytes=2 << 20):
    """Largest lane tile such that one (C, tile_l) block is ~target_block_bytes."""
    desired = max(128, (target_block_bytes // max(1, c * itemsize)) // 128 * 128)
    if hw <= desired:
        return hw        # full spatial extent in one block (always legal)
    return desired       # multiple of 128; ragged last tile is masked in-kernel


def fscore_metric(inputs, target, *, threshold=None, beta=1.0, eps=1e-7, tile_l=None):
    """Equivalent of Fscore(class_weights=1.0, threshold=threshold)(inputs, target)."""
    N, C, H, W = inputs.shape
    HW = H * W

    # free (contiguous) reshapes — no transpose, no pad
    x = inputs.reshape(N, C, HW)
    g = target.reshape(N, C, HW)

    if tile_l is None:
        tile_l = _pick_tile_l(HW, C, itemsize=4)
    ragged = (HW % tile_l) != 0
    n_l = pl.cdiv(HW, tile_l)

    per_step_bytes = C * tile_l * (jnp.dtype(x.dtype).itemsize
                                   + jnp.dtype(g.dtype).itemsize)
    vmem_limit = int(min(max(2 * per_step_bytes + (4 << 20), 16 << 20), 32 << 20))

    kernel = functools.partial(_fscore_sums_kernel, threshold=threshold,
                               hw=HW, tile_l=tile_l, ragged=ragged)

    sums = pl.pallas_call(
        kernel,
        out_shape=jax.ShapeDtypeStruct((N, C, 3), jnp.float32),
        grid_spec=pltpu.PrefetchScalarGridSpec(
            num_scalar_prefetch=0,
            grid=(N, n_l),
            in_specs=[
                pl.BlockSpec((None, C, tile_l), lambda n, l: (n, 0, l)),
                pl.BlockSpec((None, C, tile_l), lambda n, l: (n, 0, l)),
            ],
            out_specs=pl.BlockSpec((None, C, 3), lambda n, l: (n, 0, 0)),
        ),
        compiler_params=pltpu.CompilerParams(
            dimension_semantics=("parallel", "arbitrary"),
            vmem_limit_bytes=vmem_limit,
        ),
    )(x, g)

    per_class = jnp.sum(sums, axis=0)           # (C, 3) — tiny reduction in JAX
    sum_pr = per_class[:, 0]
    sum_gt = per_class[:, 1]
    sum_tp = per_class[:, 2]

    # classes 1..C-1 (class 0 / background skipped, matching the torch loop)
    tp = sum_tp[1:]
    fp = sum_pr[1:] - tp
    fn = sum_gt[1:] - tp
    b2 = beta ** 2
    scores = ((1.0 + b2) * tp + eps) / ((1.0 + b2) * tp + b2 * fn + fp + eps)
    return jnp.mean(scores)


def _fscore_reference(inputs, target, *, threshold=None, beta=1.0, eps=1e-7):
    """Pure-JAX reference mirroring the PyTorch code, for validation."""
    pr_all = jax.nn.softmax(inputs, axis=1)
    scores = []
    for i in range(1, inputs.shape[1]):
        pr = pr_all[:, i, :, :]
        gt = target[:, i, :, :]
        if threshold is not None:
            pr = (pr > threshold).astype(pr.dtype)
        tp = jnp.sum(gt * pr)
        fp = jnp.sum(pr) - tp
        fn = jnp.sum(gt) - tp
        b2 = beta ** 2
        scores.append(((1 + b2) * tp + eps) / ((1 + b2) * tp + b2 * fn + fp + eps))
    return sum(scores) / len(scores)


if __name__ == "__main__":
    key = jax.random.PRNGKey(0)
    k_in, k_gt = jax.random.split(key)

    N, C, H, W = 2, 4, 16, 16
    # logits
    inputs = jax.random.normal(k_in, (N, C, H, W), dtype=jnp.float32)
    # one-hot ground truth over channels (typical segmentation target)
    labels = jax.random.randint(k_gt, (N, H, W), 0, C)
    target = jax.nn.one_hot(labels, C, dtype=jnp.float32)          # (N, H, W, C)
    target = jnp.transpose(target, (0, 3, 1, 2))                   # (N, C, H, W)

    score = jax.block_until_ready(fscore_metric(inputs, target, threshold=None))
    ref = jax.block_until_ready(_fscore_reference(inputs, target, threshold=None))

    # tolerance loosened vs exact reference because the kernel uses the EUP
    # approximate reciprocal for the softmax denominator (~1e-3 rel. error)
    assert jnp.allclose(score, ref, rtol=5e-3, atol=5e-3), (score, ref)
    print("KERNEL_OK")
</pallas_src>

<mosaic_0001>
module attributes {stable_mosaic.version = 11 : i64} {
  func.func @_fscore_sums_kernel(%arg0: i32, %arg1: i32, %arg2: memref<1x4x256xf32, #tpu.memory_space<vmem>>, %arg3: memref<1x4x256xf32, #tpu.memory_space<vmem>>, %arg4: memref<1x4x3xf32, #tpu.memory_space<vmem>>) attributes {dimension_semantics = [#tpu.dimension_semantics<parallel>, #tpu.dimension_semantics<arbitrary>], iteration_bounds = array<i64: 2, 1>, scalar_prefetch = 0 : i64, scratch_operands = 0 : i64, tpu.core_type = #tpu.core_type<tc>, window_params = [{transform_indices = @transform_0, window_bounds = array<i64: 1, 4, 256>}, {transform_indices = @transform_1, window_bounds = array<i64: 1, 4, 256>}, {transform_indices = @transform_2, window_bounds = array<i64: 1, 4, 3>}]} {
    %c0_i32 = arith.constant 0 : i32
    %0 = arith.cmpi eq, %arg1, %c0_i32 : i32
    %1 = arith.extui %0 : i1 to i32
    %c0_i32_0 = arith.constant 0 : i32
    %2 = arith.cmpi ne, %1, %c0_i32_0 : i32
    scf.if %2 {
      %cst_26 = arith.constant 0.000000e+00 : f32
      %42 = vector.broadcast %cst_26 : f32 to vector<4x3xf32>
      %c0_27 = arith.constant 0 : index
      %c0_28 = arith.constant 0 : index
      %c0_29 = arith.constant 0 : index
      %43 = vector.load %arg4[%c0_27, %c0_28, %c0_29] : memref<1x4x3xf32, #tpu.memory_space<vmem>>, vector<1x4x3xf32>
      %44 = vector.shape_cast %43 : vector<1x4x3xf32> to vector<4x3xf32>
      %45 = vector.shape_cast %42 : vector<4x3xf32> to vector<1x4x3xf32>
      tpu.vector_store %arg4[%c0_27, %c0_28, %c0_29], %45 {strides = array<i32>} : memref<1x4x3xf32, #tpu.memory_space<vmem>>, vector<1x4x3xf32>,
    } else {
    }
    %c0 = arith.constant 0 : index
    %c0_1 = arith.constant 0 : index
    %c0_2 = arith.constant 0 : index
    %3 = vector.load %arg2[%c0, %c0_1, %c0_2] : memref<1x4x256xf32, #tpu.memory_space<vmem>>, vector<1x4x256xf32>
    %4 = vector.shape_cast %3 : vector<1x4x256xf32> to vector<4x256xf32>
    %c0_3 = arith.constant 0 : index
    %c0_4 = arith.constant 0 : index
    %c0_5 = arith.constant 0 : index
    %5 = vector.load %arg3[%c0_3, %c0_4, %c0_5] : memref<1x4x256xf32, #tpu.memory_space<vmem>>, vector<1x4x256xf32>
    %6 = vector.shape_cast %5 : vector<1x4x256xf32> to vector<4x256xf32>
    %cst = arith.constant dense<0xFF800000> : vector<256xf32>
    %7 = vector.multi_reduction <maximumf>, %4, %cst [0] : vector<4x256xf32> to vector<256xf32>
    %8 = vector.shape_cast %7 : vector<256xf32> to vector<1x256xf32>
    %9 = vector.broadcast %8 : vector<1x256xf32> to vector<4x256xf32>
    %10 = arith.subf %4, %9 : vector<4x256xf32>
    %11 = math.exp %10 : vector<4x256xf32>
    %cst_6 = arith.constant dense<0.000000e+00> : vector<256xf32>
    %12 = vector.multi_reduction <add>, %11, %cst_6 [0] : vector<4x256xf32> to vector<256xf32>
    %13 = vector.shape_cast %12 : vector<256xf32> to vector<1x256xf32>
    %14 = tpu.reciprocal %13 {approx = true} : vector<1x256xf32> -> vector<1x256xf32>
    %15 = vector.broadcast %14 : vector<1x256xf32> to vector<4x256xf32>
    %16 = arith.mulf %11, %15 : vector<4x256xf32>
    %c0_7 = arith.constant 0 : index
    %c0_8 = arith.constant 0 : index
    %c0_9 = arith.constant 0 : index
    %17 = vector.load %arg4[%c0_7, %c0_8, %c0_9] : memref<1x4x3xf32, #tpu.memory_space<vmem>>, vector<1x4x1xf32>
    %18 = vector.shape_cast %17 : vector<1x4x1xf32> to vector<4x1xf32>
    %cst_10 = arith.constant dense<0.000000e+00> : vector<4xf32>
    %19 = vector.multi_reduction <add>, %16, %cst_10 [1] : vector<4x256xf32> to vector<4xf32>
    %20 = vector.shape_cast %19 : vector<4xf32> to vector<4x1xf32>
    %21 = arith.addf %18, %20 : vector<4x1xf32>
    %c0_11 = arith.constant 0 : index
    %c0_12 = arith.constant 0 : index
    %c0_13 = arith.constant 0 : index
    %22 = vector.load %arg4[%c0_11, %c0_12, %c0_13] : memref<1x4x3xf32, #tpu.memory_space<vmem>>, vector<1x4x1xf32>
    %23 = vector.shape_cast %22 : vector<1x4x1xf32> to vector<4x1xf32>
    %24 = vector.shape_cast %21 : vector<4x1xf32> to vector<1x4x1xf32>
    tpu.vector_store %arg4[%c0_11, %c0_12, %c0_13], %24 {strides = array<i32>} : memref<1x4x3xf32, #tpu.memory_space<vmem>>, vector<1x4x1xf32>,
    %c0_14 = arith.constant 0 : index
    %c0_15 = arith.constant 0 : index
    %c1 = arith.constant 1 : index
    %25 = vector.load %arg4[%c0_14, %c0_15, %c1] : memref<1x4x3xf32, #tpu.memory_space<vmem>>, vector<1x4x1xf32>
    %26 = vector.shape_cast %25 : vector<1x4x1xf32> to vector<4x1xf32>
    %cst_16 = arith.constant dense<0.000000e+00> : vector<4xf32>
    %27 = vector.multi_reduction <add>, %6, %cst_16 [1] : vector<4x256xf32> to vector<4xf32>
    %28 = vector.shape_cast %27 : vector<4xf32> to vector<4x1xf32>
    %29 = arith.addf %26, %28 : vector<4x1xf32>
    %c0_17 = arith.constant 0 : index
    %c0_18 = arith.constant 0 : index
    %c1_19 = arith.constant 1 : index
    %30 = vector.load %arg4[%c0_17, %c0_18, %c1_19] : memref<1x4x3xf32, #tpu.memory_space<vmem>>, vector<1x4x1xf32>
    %31 = vector.shape_cast %30 : vector<1x4x1xf32> to vector<4x1xf32>
    %32 = vector.shape_cast %29 : vector<4x1xf32> to vector<1x4x1xf32>
    tpu.vector_store %arg4[%c0_17, %c0_18, %c1_19], %32 {strides = array<i32>} : memref<1x4x3xf32, #tpu.memory_space<vmem>>, vector<1x4x1xf32>,
    %c0_20 = arith.constant 0 : index
    %c0_21 = arith.constant 0 : index
    %c2 = arith.constant 2 : index
    %33 = vector.load %arg4[%c0_20, %c0_21, %c2] : memref<1x4x3xf32, #tpu.memory_space<vmem>>, vector<1x4x1xf32>
    %34 = vector.shape_cast %33 : vector<1x4x1xf32> to vector<4x1xf32>
    %35 = arith.mulf %16, %6 : vector<4x256xf32>
    %cst_22 = arith.constant dense<0.000000e+00> : vector<4xf32>
    %36 = vector.multi_reduction <add>, %35, %cst_22 [1] : vector<4x256xf32> to vector<4xf32>
    %37 = vector.shape_cast %36 : vector<4xf32> to vector<4x1xf32>
    %38 = arith.addf %34, %37 : vector<4x1xf32>
    %c0_23 = arith.constant 0 : index
    %c0_24 = arith.constant 0 : index
    %c2_25 = arith.constant 2 : index
    %39 = vector.load %arg4[%c0_23, %c0_24, %c2_25] : memref<1x4x3xf32, #tpu.memory_space<vmem>>, vector<1x4x1xf32>
    %40 = vector.shape_cast %39 : vector<1x4x1xf32> to vector<4x1xf32>
    %41 = vector.shape_cast %38 : vector<4x1xf32> to vector<1x4x1xf32>
    tpu.vector_store %arg4[%c0_23, %c0_24, %c2_25], %41 {strides = array<i32>} : memref<1x4x3xf32, #tpu.memory_space<vmem>>, vector<1x4x1xf32>,
    return
  }
  func.func @transform_0(%arg0: i32, %arg1: i32) -> (i32, i32, i32) {
    %c0_i32 = arith.constant 0 : i32
    %c0_i32_0 = arith.constant 0 : i32
    return %arg0, %c0_i32, %arg1 : i32, i32, i32
  }
  func.func @transform_1(%arg0: i32, %arg1: i32) -> (i32, i32, i32) {
    %c0_i32 = arith.constant 0 : i32
    %c0_i32_0 = arith.constant 0 : i32
    return %arg0, %c0_i32, %arg1 : i32, i32, i32
  }
  func.func @transform_2(%arg0: i32, %arg1: i32) -> (i32, i32, i32) {
    %c0_i32 = arith.constant 0 : i32
    %c0_i32_0 = arith.constant 0 : i32
    %c0_i32_1 = arith.constant 0 : i32
    return %arg0, %c0_i32, %c0_i32_0 : i32, i32, i32
  }
}

</mosaic_0001>

<bundles_post_ra>
// kernel: tpu_custom_call.1
= control target key start
LH: loop header
LB: loop body
LE: loop exit
PB: predicated region body
PF: predicated region fallthrough
CT: control target
= control target key end

     0   :  { %7 = vsyncpa [#allocation3], 0  ;;  %s781_s0 = inlined_call_operand.hbm [shape: f32[2,4,256], index: 0, kind: input, shape index: {}]   ;;  %s782_s1 = inlined_call_operand.hbm [shape: f32[2,4,256], index: 1, kind: input, shape index: {}]   ;;  %s783_s2 = inlined_call_operand.vmem [shape: f32[2,4,3], index: 2, kind: output, shape index: {}]  }
   0x1   :  { %9 = vsyncpa [#allocation3 + $0x1], 0 }
   0x2   :  { %10 = vsyncpa [#allocation5], 0 }
   0x3   :  { %12 = vsyncpa [#allocation5 + $0x1], 0  ;;  %s633_s9 = smov 0   ;;  %s635_s10 = smov 0  }
   0x4   :  { %s637_s11 = smov 0   ;;  %s639_s12 = smov 0  }
   0x5   :  { %s641_s13 = smov 0   ;;  %s643_s14 = smov 0  }
   0x6 LB: > { %s416_s15 = sadd.s32 4294967295, %s613_s14   ;;  %s30_s16 = sadd.s32 1, %s609_s13  ;;  %s613_s14 = sphi %s643_s14, %s18_s14   ;;  %s609_s13 = sphi %s641_s13, %s792_s13   ;;  %s605_s12 = sphi %s639_s12, %s791_s12   ;;  %s601_s11 = sphi %s637_s11, %s790_s11   ;;  %s597_s10 = sphi %s635_s10, %s789_s10   ;;  %s593_s9 = sphi %s633_s9, %s788_s9  }
   0x7   : > { %p32_p0 = scmp.ge.s32.totalorder %s30_s16, 2  ;;  %s39_s17 = sadd.s32 1, %s601_s11 }
   0x8   : > { %p46_p1 = scmp.ne.s32.totalorder %s601_s11, %s597_s10  ;;  %p47_p2 = scmp.eq.s32.totalorder %s613_s14, 0 }
   0x9   : > { %s794_s16 = smov (%p32_p0, %s30_s16), 0  ;;  %p52_p4 = scmp.ne.s32.totalorder %s597_s10, %s593_s9 }
   0xa   : > { %p669_p3 = por %p47_p2, %p46_p1  ;;  %s34_s19 = ssub.s32 %s609_s13, %s794_s16 }
   0xb   : > { %p53_p5 = scmp.eq.s32.totalorder %s416_s15, 0  ;;  %p37_p6 = scmp.eq.s32.totalorder %s34_s19, 0 }
   0xc   : > { %p445_p8 = scmp.lt.s32.totalorder %s613_s14, 2  ;;  %s685_s22 = sand.u32 1, %s601_s11  }
   0xd   : > { %p676_p7 = por %p53_p5, %p52_p4  ;;  %s432_s23 = sshll.u32 %s609_s13, 7 }
   0xe   : > { %s682_s21 = scalar_select %p37_p6, %s601_s11, %s39_s17  }
   0xf   : > { %s420_s24 = sshll.u32 %s685_s22, 3  ;;  %s142_s27 = scalar_lea.hbm %s781_s0, %s432_s23 }
  0x10   : > { %s134_s28 = scalar_lea.vmem [#allocation2], %s420_s24  ;;  %p694_p9 = pnand %p445_p8, %p669_p3 }
  0x11   : > { %s144_s29 = sshll.u32 %s134_s28, 4  ;;  %p426_p10 = scmp.ge.s32.totalorder %s613_s14, 1  ;;  %s145_s29 = int_to_ptr.vmem [resolvable:$true] %s144_s29 }
  0x12   : > { %p170_p11 = scmp.lt.s32.totalorder %s613_s14, 3  ;;  %s131_s3 = scalar_lea.sflag [#allocation3], %s685_s22 }
  0x13   : > { %p505_p12 = pneg %p694_p9  ;;  %s516_s4 = scalar_lea.vmem %s145_s29, 128 }
  0x14   : > { %p517_p13 = scmp.ne.s32.totalorder %s145_s29, %s516_s4  ;;  %s615_s5 = smov [#allocation2]  }
  0x15   : > { %s521_s6 = sshll.u32 %s615_s5, 4  ;;  %s522_s6 = int_to_ptr.vmem [resolvable:$false] %s521_s6 }
  0x16   : > { %p519_p0 = pnand %p517_p13, %p505_p12  ;;  %s523_s7 = scalar_lea.vmem %s522_s6, 256 }
  0x17   : > { %p524_p2 = scmp.lt.s32.totalorder %s145_s29, %s522_s6  ;;  %p525_p3 = scmp.lt.s32.totalorder %s523_s7, %s516_s4 }
  0x18   : > { %p520_p1 = pneg %p519_p0 }
  0x19   : > { %p526_p4 = por %p525_p3, %p524_p2 }
  0x1b   : > { %p527_p5 = pnand %p526_p4, %p520_p1 }
  0x1d   : > { %530 = shalt.err (!%p527_p5)
}
  0x1e   : > { %441 = dma.hbm_to_vmem [thread:$0]  (!%p694_p9), %s142_s27, 128, %s145_s29, %s131_s3  }
  0x1f   : > { %p712_p6 = pnand %p426_p10, %p170_p11  ;;  %s163_s17 = scalar_lea.hbm %s782_s1, %s432_s23 }
  0x20   : > { %s155_s18 = scalar_lea.vmem [#allocation4], %s420_s24  ;;  %s152_s25 = scalar_lea.sflag [#allocation5], %s685_s22 }
  0x21   : > { %s165_s19 = sshll.u32 %s155_s18, 4  ;;  %s616_s27 = smov [#allocation4]   ;;  %s166_s19 = int_to_ptr.vmem [resolvable:$true] %s165_s19 }
  0x22   : > { %s544_s26 = scalar_lea.vmem %s166_s19, 128  ;;  %s549_s28 = sshll.u32 %s616_s27, 4  ;;  %s550_s28 = int_to_ptr.vmem [resolvable:$false] %s549_s28 }
  0x23   : > { %p545_p8 = scmp.ne.s32.totalorder %s166_s19, %s544_s26  ;;  %s551_s29 = scalar_lea.vmem %s550_s28, 256 }
  0x24   : > { %p552_p10 = scmp.lt.s32.totalorder %s166_s19, %s550_s28  ;;  %p553_p11 = scmp.lt.s32.totalorder %s551_s29, %s544_s26 }
  0x25   : > { %p547_p13 = pnand %p545_p8, %p505_p12 }
  0x26   : > { %p554_p1 = por %p553_p11, %p552_p10 }
  0x27   : > { %p548_p0 = pneg %p547_p13 }
  0x29   : > { %p555_p2 = pnand %p554_p1, %p548_p0 }
  0x2b   : > { %558 = shalt.err (!%p555_p2)
}
  0x2c   : > { %444 = dma.hbm_to_vmem [thread:$0]  (!%p694_p9), %s163_s17, 128, %s166_s19, %s152_s25  }
  0x2d   : > { %174 = sbr.rel (%p712_p6) target bundleno = 288 (0x120), region = 28  ;;  %s176_s22 = sand.u32 (!%p712_p6), 1, %s597_s10  }
  0x2e   : > { %s427_s23 = sshll.u32 (!%p712_p6), %s176_s22, 3  ;;  %s177_s24 = scalar_lea.sflag (!%p712_p6), [#allocation3], %s176_s22 }
  0x2f   : > { %s180_s3 = scalar_lea.vmem (!%p712_p6), [#allocation2], %s427_s23 }
  0x32   : > { %584 = dma.done.wait (%p676_p7), %s177_s24, 128  }
  0x33   : > { %586 = vsyncadd (%p676_p7), %s177_s24, 4294967168  ;;  %s186_s4 = scalar_lea.sflag [#allocation5], %s176_s22  ;;  %s732_s5 = scalar_lea.vmem [#allocation4], %s427_s23 }
  0x34   : > { %588 = dma.done.wait (%p676_p7), %s186_s4, 128  }
  0x35   : > { %590 = vsyncadd (%p676_p7), %s186_s4, 4294967168  ;;  %p216_p9 = scmp.lt.s32.totalorder %s605_s12, 1  ;;  %vm224_vm0 = vcmask 19456   ;;  %vm231_vm1 = vcmask 1043456   ;;  %v617_v0 = vmov 0.0   ;;  %v226_v1 = vld [vmem:[%s180_s3] sm:$0xff] }
  0x36   : > { %v229_v2 = vcombine.high %v226_v1, %v226_v1  ;;  %v232_v3 = vsel %vm231_vm1, %v226_v1, -inf  ;;  %v227_v38 = vld [vmem:[%s732_s5] sm:$0xff]  ;;  %vm287_vm2 = vcmask 3072   ;;  %vm299_vm3 = vcmask 11272  }
  0x37   : > { %s796_s12 = smov (!%p216_p9, %s605_s12), 1  ;;  %v233_v4 = vrot.slane %v232_v3, 4  ;;  %v291_v41 = vcombine.high %v227_v38, %v227_v38  ;;  %v293_v45 = vsel %vm231_vm1, %v227_v38, 0.0  ;;  %vm312_vm4 = vcmask 19472  }
  0x38   : > { %s429_s30 = sshll.u32 %s796_s12, 2  ;;  %v239_v5 = vsel %vm231_vm1, %v229_v2, -inf }
  0x39   : > { %s743_s8 = scalar_lea.vmem %s783_s2, %s429_s30  ;;  %v234_v6 = vmax.f32 %v232_v3, %v233_v4  ;;  %v240_v7 = vrot.slane %v239_v5, 4  ;;  %v294_v47 = vsel %vm231_vm1, %v291_v41, 0.0 }
  0x3a   : > { %225 = vst.msk [vmem:[%s743_s8] sm:$0xf] %vm224_vm0, %v617_v0  ;;  %v295_v52 = vadd.f32 %v294_v47, %v293_v45 }
  0x3b   : > { %v235_v8 = vrot.slane %v234_v6, 2  ;;  %v241_v9 = vmax.f32 %v239_v5, %v240_v7 }
  0x3d   : > { %v236_v10 = vmax.f32 %v234_v6, %v235_v8  ;;  %v242_v11 = vrot.slane %v241_v9, 2 }
  0x3f   : > { %v237_v12 = vrot.slane %v236_v10, 1  ;;  %v243_v13 = vmax.f32 %v241_v9, %v242_v11 }
  0x41   : > { %v238_v14 = vmax.f32 %v236_v10, %v237_v12  ;;  %v244_v15 = vrot.slane %v243_v13, 1  ;;  %v277_v54 = vld [vmem:[%s743_s8] sm:$0xf] }
  0x43   : > { %v245_v16 = vmax.f32 %v243_v13, %v244_v15 }
  0x45   : > { %v248_v17 = vcombine.low %v238_v14, %v245_v16 }
  0x47   : > { %v250_v18 = vsub.f32 %v226_v1, %v248_v17 }
  0x49   : > { %v251_v19 = vmul.f32 1.442695, %v250_v18 }
  0x4b   : > { %497 = vpow2.f32 %v251_v19 }
  0x58   : > { %v498_v20 = vpop.eup %497 }
  0x59   : > { %v254_v21 = vcombine.high %v498_v20, %v498_v20  ;;  %v256_v22 = vsel %vm231_vm1, %v498_v20, 0.0 }
  0x5a   : > { %v257_v23 = vrot.slane %v256_v22, 4 }
  0x5b   : > { %v263_v24 = vsel %vm231_vm1, %v254_v21, 0.0 }
  0x5c   : > { %v258_v25 = vadd.f32 %v257_v23, %v256_v22  ;;  %v264_v26 = vrot.slane %v263_v24, 4 }
  0x5e   : > { %v259_v27 = vrot.slane %v258_v25, 2  ;;  %v265_v28 = vadd.f32 %v264_v26, %v263_v24 }
  0x60   : > { %v260_v29 = vadd.f32 %v259_v27, %v258_v25  ;;  %v266_v30 = vrot.slane %v265_v28, 2 }
  0x62   : > { %v261_v31 = vrot.slane %v260_v29, 1  ;;  %v267_v32 = vadd.f32 %v266_v30, %v265_v28 }
  0x64   : > { %v262_v33 = vadd.f32 %v261_v31, %v260_v29  ;;  %v268_v34 = vrot.slane %v267_v32, 1 }
  0x66   : > { %v269_v35 = vadd.f32 %v268_v34, %v267_v32  ;;  %499 = vrcp.f32 %v262_v33 }
  0x68   : > { %501 = vrcp.f32 %v269_v35 }
  0x73   : > { %v500_v36 = vpop.eup %499 }
  0x75   : > { %v502_v37 = vpop.eup %501 }
  0x76   : > { %v274_v39 = vcombine.low %v500_v36, %v502_v37 }
  0x78   : > { %v276_v40 = vmul.f32 %v498_v20, %v274_v39 }
  0x7a   : > { %v279_v42 = vcombine.high %v276_v40, %v276_v40  ;;  %v281_v43 = vsel %vm231_vm1, %v276_v40, 0.0  ;;  %v302_v44 = vmul.f32 %v276_v40, %v227_v38 }
  0x7c   : > { %v282_v46 = vsel %vm231_vm1, %v279_v42, 0.0  ;;  %v304_v48 = vcombine.high %v302_v44, %v302_v44  ;;  %v306_v49 = vsel %vm231_vm1, %v302_v44, 0.0 }
  0x7d   : > { %v283_v50 = vadd.f32 %v282_v46, %v281_v43 }
  0x7e   : > { %v307_v51 = vsel %vm231_vm1, %v304_v48, 0.0 }
  0x7f   : > { %284 = vadd.xlane.f32.xlu0 %v283_v50  ;;  %v308_v53 = vadd.f32 %v307_v51, %v306_v49 }
  0x81   : > { %309 = vadd.xlane.f32.xlu1 %v308_v53 }
  0x83   : > { %296 = vadd.xlane.f32.xlu0 %v295_v52 }
 0x108   : > { %v285_v55 = vpop.xlane.xlu0 %284 }
 0x109   : > { %v286_v56 = vadd.f32 %v285_v55, %v277_v54 }
 0x10a   : > { %v310_v60 = vpop.xlane.xlu1 %309 }
 0x10b   : > { %288 = vst.msk [vmem:[%s743_s8] sm:$0xf] %vm287_vm2, %v286_v56 }
 0x10c   : > { %v297_v57 = vpop.xlane.xlu0 %296 }
 0x112   : > { %v289_v58 = vld [vmem:[%s743_s8] sm:$0xf] }
 0x113   : > { %v298_v59 = vadd.f32 %v297_v57, %v289_v58 }
 0x115   : > { %300 = vst.msk [vmem:[%s743_s8] sm:$0xf] %vm299_vm3, %v298_v59 }
 0x11c   : > { %v301_v61 = vld [vmem:[%s743_s8] sm:$0xf] }
 0x11d   : > { %v311_v62 = vadd.f32 %v310_v60, %v301_v61 }
 0x11f   : > { %313 = vst.msk [vmem:[%s743_s8] sm:$0xf] %vm312_vm4, %v311_v62 }
 0x120 PF: > { %s18_s14 = sadd.s32 1, %s613_s14   ;;  %s788_s9 = smov %s597_s10 }
 0x121   : > { %p15_p7 = scmp.ge.s32.totalorder %s18_s14, 4   ;;  %s789_s10 = smov %s601_s11 }
 0x122   : > { %s790_s11 = smov %s682_s21  ;;  %s791_s12 = smov %s609_s13 }
 0x123   : > { %s792_s13 = smov %s794_s16  ;;  %17 = sbr.rel (!%p15_p7) target bundleno = 6 (0x6), region = 85 }
 0x128   :  { %333 = vsyncpa [#allocation3], 1 }
 0x129   :  { %335 = vsyncpa [#allocation3 + $0x1], 1 }
 0x12a   :  { %336 = vsyncpa [#allocation5], 1 }
 0x12b   :  { %338 = vsyncpa [#allocation5 + $0x1], 1 }

</bundles_post_ra>
